<compile_context>
chip_gen: v7x
topology: tpu7x:2x2x1
jax: 0.10.0
libtpu: 0.0.40
codegen_flags: <defaults>
</compile_context>

<pallas_src>
import math
import jax
import jax.numpy as jnp
from jax.experimental import pallas as pl
from jax.experimental.pallas import tpu as pltpu

LN_EPS = 1e-5  # torch.nn.LayerNorm default


def _round_up(n, m):
    return ((n + m - 1) // m) * m


def _cdiv(a, b):
    return -(-a // b)


def _vmem_capacity_bytes():
    """Physical VMEM per TensorCore; falls back to the smallest (v7x: 64 MiB)."""
    try:
        info = pltpu.get_tpu_info()
        cap = getattr(info, "vmem_capacity_bytes", None)
        if cap:
            return int(cap)
    except Exception:
        pass
    return 64 * 1024 * 1024


def _footprint_bytes(tb, D, c_tile, x_item, out_item):
    """Estimated VMEM footprint of one pipelined grid step."""
    f = 2 * tb * D * x_item            # x, double-buffered
    f += 2 * D * c_tile * x_item       # folded W^T tiles (cast to x.dtype)
    f += 2 * tb * c_tile * out_item    # output tiles, double-buffered
    f += 2 * c_tile * 4                # folded bias (f32)
    f += tb * D * x_item               # LN scratch
    f += 3 * tb * D * 4                # f32 LN temporaries headroom
    return f


def _pick_batch_tile(B, D, c_tile, x_dtype, out_dtype, vmem_budget, target=512):
    x_item = jnp.dtype(x_dtype).itemsize
    out_item = jnp.dtype(out_dtype).itemsize
    sub = 8 if x_item >= 4 else 16     # sublane multiple for the dtype

    # Largest sublane-aligned tile (<= target) whose footprint fits the VMEM budget.
    max_tb = max(sub, _round_up(target, sub))
    while max_tb > sub and _footprint_bytes(max_tb, D, c_tile, x_item, out_item) > vmem_budget:
        max_tb -= sub
    max_tb = min(max_tb, _round_up(B, sub))
    max_tb = max(max_tb, sub)

    # Minimize (padded rows processed) + per-step overhead (in row-equivalents).
    best_t, best_cost = sub, None
    t = sub
    while t <= max_tb:
        steps = _cdiv(B, t)
        cost = steps * t + 32 * steps
        if best_cost is None or cost <= best_cost:
            best_cost, best_t = cost, t
        t += sub
    return best_t


def ln_linear_kernel(x_ref, w_ref, b_ref, o_ref, y_scr):
    # LayerNorm statistics (f32, biased variance + eps, matching torch) are computed once
    # per batch tile (class-tile index j == 0) and cached in VMEM in the input dtype.
    @pl.when(pl.program_id(1) == 0)
    def _():
        x = x_ref[...].astype(jnp.float32)                            # (TB, D)
        mean = jnp.mean(x, axis=-1, keepdims=True)
        centered = x - mean
        var = jnp.mean(centered * centered, axis=-1, keepdims=True)   # biased var
        xn = centered * jax.lax.rsqrt(var + LN_EPS)
        y_scr[...] = xn.astype(y_scr.dtype)

    # MXU matmul in the input dtype with f32 accumulation; folded bias added in f32.
    out = jnp.dot(y_scr[...], w_ref[...], preferred_element_type=jnp.float32)  # (TB, TC)
    out = out + b_ref[...]
    o_ref[...] = out.astype(o_ref.dtype)


def linear_classifier_forward(x, gamma, beta, weight, bias, *, batch_tile=512):
    """LayerNorm(D) followed by Linear(D, C).

    x: (..., D); gamma/beta: (D,); weight: (C, D) (torch layout); bias: (C,).
    Returns (..., C) in x.dtype.
    """
    orig_shape = x.shape
    D = orig_shape[-1]
    C = weight.shape[0]
    x2 = x.reshape(-1, D)
    B = x2.shape[0]

    # ---- layout / parameter glue (outside the kernel) ----------------------
    # Lane-dense class dim; keep c_tile >= 256 (v6e/v7x MXU width) when tiling the class dim.
    C_pad = _round_up(C, 128)
    if C_pad <= 512:
        c_tile = C_pad
    else:
        C_pad = _round_up(C, 256)
        c_tile = 512 if C_pad % 512 == 0 else 256

    vmem_cap = _vmem_capacity_bytes()
    vmem_budget = int(0.6 * vmem_cap)
    out_dtype = x2.dtype

    bt = _pick_batch_tile(B, D, c_tile, x2.dtype, out_dtype, vmem_budget, target=batch_tile)
    B_pad = _cdiv(B, bt) * bt

    if B_pad != B:
        # Zero rows -> LN stays finite (eps in rsqrt); padded rows are dropped below.
        x2 = jnp.pad(x2, ((0, B_pad - B), (0, 0)))

    # Fold gamma into the weight and beta into the bias (done once in XLA, O(D*C)).
    w32 = weight.astype(jnp.float32)
    w_folded = (gamma.astype(jnp.float32)[:, None] * w32.T)                       # (D, C)
    b_folded = beta.astype(jnp.float32) @ w32.T + bias.astype(jnp.float32)        # (C,)
    w_t = jnp.pad(w_folded, ((0, 0), (0, C_pad - C))).astype(x2.dtype)            # (D, C_pad)
    bias2 = jnp.pad(b_folded, (0, C_pad - C)).reshape(1, C_pad)                   # (1, C_pad) f32

    grid = (B_pad // bt, C_pad // c_tile)
    vmem_limit = min(vmem_cap, int(0.75 * vmem_cap))

    out = pl.pallas_call(
        ln_linear_kernel,
        out_shape=jax.ShapeDtypeStruct((B_pad, C_pad), out_dtype),
        grid=grid,
        in_specs=[
            pl.BlockSpec((bt, D),      lambda i, j: (i, 0)),   # x tile (invariant in j)
            pl.BlockSpec((D, c_tile),  lambda i, j: (0, j)),   # folded W^T tile
            pl.BlockSpec((1, c_tile),  lambda i, j: (0, j)),   # folded bias tile (f32)
        ],
        out_specs=pl.BlockSpec((bt, c_tile), lambda i, j: (i, j)),
        scratch_shapes=[pltpu.VMEM((bt, D), x2.dtype)],        # cached LN result
        compiler_params=pltpu.CompilerParams(
            dimension_semantics=("parallel", "arbitrary"),
            vmem_limit_bytes=vmem_limit),
    )(x2, w_t, bias2)

    if B_pad != B or C_pad != C:
        out = out[:B, :C]
    return out.reshape(orig_shape[:-1] + (C,))


if __name__ == "__main__":
    # Small shapes consistent with the module: dimension=32, class_number=10, batch=16.
    B, D, C = 16, 32, 10
    key = jax.random.PRNGKey(0)
    kx, kw, kb, kg, kbeta = jax.random.split(key, 5)

    x = jax.random.normal(kx, (B, D), dtype=jnp.float32)

    # Deterministic parameters (non-trivial gamma/beta to exercise the fold).
    gamma = jax.random.uniform(kg, (D,), jnp.float32, 0.5, 1.5)
    beta = jax.random.uniform(kbeta, (D,), jnp.float32, -0.5, 0.5)
    bound = 1.0 / math.sqrt(D)
    weight = jax.random.uniform(kw, (C, D), jnp.float32, -bound, bound)  # nn.Linear layout
    bias = jax.random.uniform(kb, (C,), jnp.float32, -bound, bound)

    out = linear_classifier_forward(x, gamma, beta, weight, bias)
    out = jax.block_until_ready(out)

    # Pure-JAX reference check (unfolded path).
    mean = jnp.mean(x, axis=-1, keepdims=True)
    var = jnp.mean((x - mean) ** 2, axis=-1, keepdims=True)
    xn = (x - mean) / jnp.sqrt(var + LN_EPS)
    ref = (xn * gamma + beta) @ weight.T + bias
    assert out.shape == (B, C)
    assert jnp.allclose(out, ref, atol=2e-5, rtol=2e-5), "mismatch vs reference"

    print("KERNEL_OK")
</pallas_src>

<mosaic_0001>
module attributes {stable_mosaic.version = 11 : i64} {
  func.func @ln_linear_kernel(%arg0: i32, %arg1: i32, %arg2: memref<16x32xf32, #tpu.memory_space<vmem>>, %arg3: memref<32x128xf32, #tpu.memory_space<vmem>>, %arg4: memref<1x128xf32, #tpu.memory_space<vmem>>, %arg5: memref<16x128xf32, #tpu.memory_space<vmem>>, %arg6: memref<16x32xf32, #tpu.memory_space<vmem>>) attributes {dimension_semantics = [#tpu.dimension_semantics<parallel>, #tpu.dimension_semantics<arbitrary>], iteration_bounds = array<i64: 1, 1>, scalar_prefetch = 0 : i64, scratch_operands = 1 : i64, tpu.core_type = #tpu.core_type<tc>, window_params = [{transform_indices = @transform_0, window_bounds = array<i64: 16, 32>}, {transform_indices = @transform_1, window_bounds = array<i64: 32, 128>}, {transform_indices = @transform_2, window_bounds = array<i64: 1, 128>}, {transform_indices = @transform_3, window_bounds = array<i64: 16, 128>}]} {
    %c0_i32 = arith.constant 0 : i32
    %0 = arith.cmpi eq, %arg1, %c0_i32 : i32
    %1 = arith.extui %0 : i1 to i32
    %c0_i32_0 = arith.constant 0 : i32
    %2 = arith.cmpi ne, %1, %c0_i32_0 : i32
    scf.if %2 {
      %c0_8 = arith.constant 0 : index
      %c0_9 = arith.constant 0 : index
      %10 = vector.load %arg2[%c0_8, %c0_9] : memref<16x32xf32, #tpu.memory_space<vmem>>, vector<16x32xf32>
      %cst_10 = arith.constant dense<0.000000e+00> : vector<16xf32>
      %11 = vector.multi_reduction <add>, %10, %cst_10 [1] : vector<16x32xf32> to vector<16xf32>
      %12 = vector.shape_cast %11 : vector<16xf32> to vector<16x1xf32>
      %cst_11 = arith.constant 3.200000e+01 : f32
      %13 = vector.broadcast %cst_11 : f32 to vector<16x1xf32>
      %14 = arith.divf %12, %13 : vector<16x1xf32>
      %15 = vector.broadcast %14 : vector<16x1xf32> to vector<16x32xf32>
      %16 = arith.subf %10, %15 : vector<16x32xf32>
      %17 = arith.mulf %16, %16 : vector<16x32xf32>
      %cst_12 = arith.constant dense<0.000000e+00> : vector<16xf32>
      %18 = vector.multi_reduction <add>, %17, %cst_12 [1] : vector<16x32xf32> to vector<16xf32>
      %19 = vector.shape_cast %18 : vector<16xf32> to vector<16x1xf32>
      %cst_13 = arith.constant 3.200000e+01 : f32
      %20 = vector.broadcast %cst_13 : f32 to vector<16x1xf32>
      %21 = arith.divf %19, %20 : vector<16x1xf32>
      %cst_14 = arith.constant 9.99999974E-6 : f32
      %22 = vector.broadcast %cst_14 : f32 to vector<16x1xf32>
      %23 = arith.addf %21, %22 : vector<16x1xf32>
      %24 = math.rsqrt %23 : vector<16x1xf32>
      %25 = vector.broadcast %24 : vector<16x1xf32> to vector<16x32xf32>
      %26 = arith.mulf %16, %25 : vector<16x32xf32>
      %c0_15 = arith.constant 0 : index
      %c0_16 = arith.constant 0 : index
      %27 = vector.load %arg6[%c0_15, %c0_16] : memref<16x32xf32, #tpu.memory_space<vmem>>, vector<16x32xf32>
      tpu.vector_store %arg6[%c0_15, %c0_16], %26 {strides = array<i32>} : memref<16x32xf32, #tpu.memory_space<vmem>>, vector<16x32xf32>,
    } else {
    }
    %c0 = arith.constant 0 : index
    %c0_1 = arith.constant 0 : index
    %3 = vector.load %arg6[%c0, %c0_1] : memref<16x32xf32, #tpu.memory_space<vmem>>, vector<16x32xf32>
    %c0_2 = arith.constant 0 : index
    %c0_3 = arith.constant 0 : index
    %4 = vector.load %arg3[%c0_2, %c0_3] : memref<32x128xf32, #tpu.memory_space<vmem>>, vector<32x128xf32>
    %cst = arith.constant dense<0.000000e+00> : vector<16x128xf32>
    %5 = tpu.matmul %3, %4, %cst {dimension_numbers = #tpu.dot_dimension_numbers<[1], [0], [0], [1], [0, 0, 1, 1], [], []>} : vector<16x32xf32>, vector<32x128xf32>, vector<16x128xf32> -> vector<16x128xf32>
    %c0_4 = arith.constant 0 : index
    %c0_5 = arith.constant 0 : index
    %6 = vector.load %arg4[%c0_4, %c0_5] : memref<1x128xf32, #tpu.memory_space<vmem>>, vector<1x128xf32>
    %7 = vector.broadcast %6 : vector<1x128xf32> to vector<16x128xf32>
    %8 = arith.addf %5, %7 : vector<16x128xf32>
    %c0_6 = arith.constant 0 : index
    %c0_7 = arith.constant 0 : index
    %9 = vector.load %arg5[%c0_6, %c0_7] : memref<16x128xf32, #tpu.memory_space<vmem>>, vector<16x128xf32>
    tpu.vector_store %arg5[%c0_6, %c0_7], %8 {strides = array<i32>} : memref<16x128xf32, #tpu.memory_space<vmem>>, vector<16x128xf32>,
    return
  }
  func.func @transform_0(%arg0: i32, %arg1: i32) -> (i32, i32) {
    %c0_i32 = arith.constant 0 : i32
    %c0_i32_0 = arith.constant 0 : i32
    return %arg0, %c0_i32 : i32, i32
  }
  func.func @transform_1(%arg0: i32, %arg1: i32) -> (i32, i32) {
    %c0_i32 = arith.constant 0 : i32
    %c0_i32_0 = arith.constant 0 : i32
    return %c0_i32, %arg1 : i32, i32
  }
  func.func @transform_2(%arg0: i32, %arg1: i32) -> (i32, i32) {
    %c0_i32 = arith.constant 0 : i32
    %c0_i32_0 = arith.constant 0 : i32
    return %c0_i32, %arg1 : i32, i32
  }
  func.func @transform_3(%arg0: i32, %arg1: i32) -> (i32, i32) {
    %c0_i32 = arith.constant 0 : i32
    return %arg0, %arg1 : i32, i32
  }
}

</mosaic_0001>

<bundles_post_ra>
// kernel: tpu_custom_call.1
= control target key start
LH: loop header
LB: loop body
LE: loop exit
PB: predicated region body
PF: predicated region fallthrough
CT: control target
= control target key end

     0   :  { %8 = vsyncpa [#allocation4], 0  ;;  %s384_s0 = inlined_call_operand.hbm [shape: f32[16,32], index: 0, kind: input, shape index: {}]   ;;  %s385_s1 = inlined_call_operand.hbm [shape: f32[32,128], index: 1, kind: input, shape index: {}]   ;;  %s386_s2 = inlined_call_operand.vmem [shape: f32[1,128], index: 2, kind: input, shape index: {}]   ;;  %s387_s3 = inlined_call_operand.hbm [shape: f32[16,128], index: 3, kind: output, shape index: {}]  }
   0x1   :  { %9 = vsyncpa [#allocation7], 0 }
   0x2   :  { %10 = vsyncpa [#allocation5], 0  ;;  %s303_s12 = smov [#allocation3]   ;;  %s231_s16 = scalar_lea.hbm %s384_s0, 256 }
   0x3   :  { %s16_s13 = sshll.u32 %s303_s12, 4  ;;  %p232_p0 = scmp.ne.s32.totalorder %s384_s0, %s231_s16  ;;  %s17_s13 = int_to_ptr.vmem [resolvable:$true] %s16_s13 }
   0x4   :  { %p235_p1 = scmp.lt.u32.totalorder %s231_s16, %s384_s0 }
   0x6   :  { %p237_p2 = pnand %p235_p1, %p232_p0 }
   0x8   :  { %240 = shalt.err (!%p237_p2)
}
   0x9   :  { %s241_s21 = scalar_lea.vmem %s17_s13, 256  ;;  %p246_p4 = scmp.lt.s32.totalorder %s17_s13, %s17_s13 }
   0xa   :  { %p242_p3 = scmp.ne.s32.totalorder %s17_s13, %s241_s21  ;;  %p247_p5 = scmp.lt.s32.totalorder %s241_s21, %s241_s21 }
   0xc   :  { %p248_p6 = por %p247_p5, %p246_p4 }
   0xe   :  { %p249_p7 = pnand %p248_p6, %p242_p3 }
  0x10   :  { %252 = shalt.err (!%p249_p7)
}
  0x11   :  { %s304_s22 = smov 128   ;;  %s305_s23 = smov 8  }
  0x12   :  { %22 = dma.hbm_to_vmem [thread:$0]  %s384_s0, 256, %s17_s13, [#allocation4], %s304_s22, %s304_s22, %s305_s23  }
  0x13   :  { %s306_s26 = smov [#allocation6]   ;;  %s253_s30 = scalar_lea.hbm %s385_s1, 512 }
  0x14   :  { %s28_s27 = sshll.u32 %s306_s26, 4  ;;  %p254_p8 = scmp.ne.s32.totalorder %s385_s1, %s253_s30  ;;  %s29_s27 = int_to_ptr.vmem [resolvable:$true] %s28_s27 }
  0x15   :  { %p257_p9 = scmp.lt.u32.totalorder %s253_s30, %s385_s1 }
  0x17   :  { %p259_p10 = pnand %p257_p9, %p254_p8 }
  0x19   :  { %262 = shalt.err (!%p259_p10)
}
  0x1a   :  { %s263_s8 = scalar_lea.vmem %s29_s27, 512  ;;  %p268_p12 = scmp.lt.s32.totalorder %s29_s27, %s29_s27 }
  0x1b   :  { %p264_p11 = scmp.ne.s32.totalorder %s29_s27, %s263_s8  ;;  %p269_p13 = scmp.lt.s32.totalorder %s263_s8, %s263_s8 }
  0x1d   :  { %p270_p0 = por %p269_p13, %p268_p12 }
  0x1f   :  { %p271_p1 = pnand %p270_p0, %p264_p11 }
  0x21   :  { %274 = shalt.err (!%p271_p1)
}
  0x22   :  { %34 = dma.hbm_to_vmem [thread:$0]  %s385_s1, 512, %s29_s27, [#allocation7], %s304_s22, %s304_s22, %s305_s23  }
  0x23   :  { %297 = dma.done.wait [#allocation4], 256  }
  0x24   :  { %298 = vsyncadd [#allocation4], 4294967040 }
  0x25   :  { %299 = dma.done.wait [#allocation7], 512  }
  0x26   :  { %300 = vsyncadd [#allocation7], 4294966784  ;;  %vm49_vm0 = vcmask 261120   ;;  %v47_v0 = vld [vmem:[#allocation3] sm:$0xff]  ;;  %v48_v1 = vld [vmem:[#allocation3 + $0x8] sm:$0xff]  ;;  %s307_s11 = smov [#allocation8]  }
  0x27   :  { %v50_v2 = vsel %vm49_vm0, %v47_v0, 0.0  ;;  %v53_v3 = vsel %vm49_vm0, %v48_v1, 0.0  ;;  %v81_v14 = vld [vmem:[#allocation6] sm:$0xff]  ;;  %v82_v15 = vld [vmem:[#allocation6 + $0x8] sm:$0xff]  ;;  %v83_v17 = vld [vmem:[#allocation6 + $0x10] sm:$0xff]  ;;  %s181_s12 = sshll.u32 %s307_s11, 4  ;;  %s182_s12 = int_to_ptr.vmem [resolvable:$true] %s181_s12 }
  0x28   :  { %51 = vadd.xlane.f32.xlu0 %v50_v2  ;;  %v214_v16 = vpack.c.bf16 %v82_v15, %v81_v14  ;;  %v84_v18 = vld [vmem:[#allocation6 + $0x18] sm:$0xff]  ;;  %v194_v32 = vld [vmem:[%s386_s2] ss:$0 sm:$0xff]  ;;  %s275_s13 = scalar_lea.vmem %s182_s12, 256  ;;  %p280_p3 = scmp.lt.s32.totalorder %s182_s12, %s182_s12 }
  0x29   :  { %v218_v19 = vpack.c.bf16 %v84_v18, %v83_v17  ;;  %p276_p2 = scmp.ne.s32.totalorder %s182_s12, %s275_s13  ;;  %p281_p4 = scmp.lt.s32.totalorder %s275_s13, %s275_s13 }
  0x2a   :  { %215 = vmatprep.subr.bf16.mxu0 %v214_v16 }
  0x2b   :  { %217 = vmatpush3.bf16.msra.mxu0 %v214_v16  ;;  %p282_p5 = por %p281_p4, %p280_p3 }
  0x2c   :  { %54 = vadd.xlane.f32.xlu0 %v53_v3  ;;  %219 = vmatprep.subr.bf16.mxu0 %v218_v19 }
  0x2d   :  { %p283_p6 = pnand %p282_p5, %p276_p2 }
  0x2f   :  { %221 = vmatpush3.bf16.msra.mxu0 %v218_v19 }
  0xb5   :  { %v52_v4 = vpop.xlane.xlu0 %51 }
  0xb6   :  { %v57_v5 = vmul.f32 0.03125, %v52_v4 }
  0xb8   :  { %v59_v6 = vsub.f32 %v47_v0, %v57_v5 }
  0xb9   :  { %v55_v7 = vpop.xlane.xlu0 %54 }
  0xba   :  { %v58_v8 = vmul.f32 0.03125, %v55_v7  ;;  %v61_v9 = vmul.f32 %v59_v6, %v59_v6 }
  0xbc   :  { %v60_v10 = vsub.f32 %v48_v1, %v58_v8  ;;  %v63_v11 = vsel %vm49_vm0, %v61_v9, 0.0 }
  0xbd   :  { %64 = vadd.xlane.f32.xlu1 %v63_v11 }
  0xbe   :  { %v62_v12 = vmul.f32 %v60_v10, %v60_v10 }
  0xc0   :  { %v66_v13 = vsel %vm49_vm0, %v62_v12, 0.0 }
  0xc1   :  { %67 = vadd.xlane.f32.xlu1 %v66_v13 }
 0x14a   :  { %v65_v20 = vpop.xlane.xlu1 %64 }
 0x14b   :  { %v69_v21 = vmul.f32 0.03125, %v65_v20 }
 0x14d   :  { %v71_v22 = vadd.f32 1e-05, %v69_v21 }
 0x14e   :  { %v68_v23 = vpop.xlane.xlu1 %67 }
 0x14f   :  { %227 = vrsqrt.f32 %v71_v22  ;;  %v70_v24 = vmul.f32 0.03125, %v68_v23 }
 0x151   :  { %v72_v25 = vadd.f32 1e-05, %v70_v24 }
 0x153   :  { %229 = vrsqrt.f32 %v72_v25 }
 0x159   :  { %v228_v26 = vpop.eup %227 }
 0x15a   :  { %v75_v27 = vmul.f32 %v228_v26, %v59_v6 }
 0x15c   :  { %77 = vst.msk [vmem:[#allocation2] sm:$0xff] %vm49_vm0, %v75_v27 }
 0x15d   :  { %v230_v28 = vpop.eup %229 }
 0x15e   :  { %v76_v29 = vmul.f32 %v230_v28, %v60_v10 }
 0x160   :  { %78 = vst.msk [vmem:[#allocation2 + $0x8] sm:$0xff] %vm49_vm0, %v76_v29 }
 0x163   :  { %v79_v30 = vld [vmem:[#allocation2] sm:$0xff] }
 0x164   :  { %211 = vmatprep.mubr.msk.f32.mxu0 %vm49_vm0, %v79_v30 }
 0x167   :  { %v80_v31 = vld [vmem:[#allocation2 + $0x8] sm:$0xff] }
 0x168   :  { %212 = vmatmul.mubr.msk.f32.vlgmr.msra.gmra.mrb[0].mxu0 %vm49_vm0, %v80_v31 }
 0x23b   :  { %v213_v33 = vpop.f32.mrb[0].mxu0 }
 0x23c   :  { %v171_v34 = vadd.f32 %v213_v33, %v194_v32  ;;  %v165_v35 = vpop.f32.mrb[1].mxu0 }
 0x23d   :  { %v166_v36 = vadd.f32 %v194_v32, %v165_v35 }
 0x23e   :  { %175 = vst [vmem:[#allocation8 + $0x8] sm:$0xff] %v171_v34 }
 0x23f   :  { %174 = vst [vmem:[#allocation8] sm:$0xff] %v166_v36 }
 0x240   :  { %286 = shalt.err (!%p283_p6)
}
 0x241   :  { %s287_s2 = scalar_lea.hbm %s387_s3, 256 }
 0x242   :  { %p288_p7 = scmp.ne.s32.totalorder %s387_s3, %s287_s2  ;;  %p291_p8 = scmp.lt.u32.totalorder %s287_s2, %s387_s3 }
 0x244   :  { %p293_p9 = pnand %p291_p8, %p288_p7 }
 0x246   :  { %296 = shalt.err (!%p293_p9)
}
 0x247   :  { %187 = dma.vmem_to_hbm [thread:$0]  %s182_s12, 256, %s387_s3, [#allocation5], %s304_s22, %s304_s22, %s305_s23  }
 0x248   :  { %301 = dma.done.wait [#allocation5], 256  }
 0x249   :  { %302 = vsyncadd [#allocation5], 4294967040 }
 0x24a   :  { %191 = vsyncpa [#allocation4], 1 }
 0x24b   :  { %192 = vsyncpa [#allocation7], 1 }
 0x24c   :  { %193 = vsyncpa [#allocation5], 1 }

</bundles_post_ra>
